<compile_context>
chip_gen: v7x
topology: tpu7x:2x2x1
jax: 0.10.0
libtpu: 0.0.40
codegen_flags: <defaults>
</compile_context>

<pallas_src>
import jax
import jax.numpy as jnp
from jax.experimental import pallas as pl
from jax.experimental.pallas import tpu as pltpu

_COLS = 512                 # lane-dense width (multiple of 128 -> unmasked vst)
_ROW_TILE = 1024            # 1024 x 512 x 4B = 2 MiB / buffer for the tiled path
_SMALL_LIMIT = 2 << 20      # tensors <= 2 MiB go through the single fused call


def _sublane_multiple(dtype):
    # (sublane, 128) packing minimum: 8 rows for 4-byte, 16 for 2-byte, 32 for 1-byte
    return {4: 8, 2: 16, 1: 32}.get(jnp.dtype(dtype).itemsize, 8)


def _lane_dense_2d(a):
    """Free (row-major) reshape to a lane-dense 2-D view; no pad, no copy."""
    n = int(a.size)
    flat = a.reshape(-1)
    for cols in (512, 256, 128):
        if n >= cols and n % cols == 0:
            return flat.reshape(n // cols, cols)
    return flat.reshape(1, n)   # tiny ragged tensors: masked store, negligible


def _scale_relu6(v_ref, o_ref):
    # relu6(x*2 - 1); weak-typed constants keep the tensor's native dtype
    v = v_ref[...] * 2 - 1
    o_ref[...] = jnp.minimum(jnp.maximum(v, 0), 6)


def _fused_small_kernel(*refs):
    # refs = (in_0..in_{n-1}, out_0..out_{n-1}); unrolled at trace time
    n = len(refs) // 2
    for i_ref, o_ref in zip(refs[:n], refs[n:]):
        _scale_relu6(i_ref, o_ref)


def _run_fused_small(arrays):
    """One pallas_call for all small tensors: one in-ref + one out-ref each."""
    views = [_lane_dense_2d(a) for a in arrays]
    vmem = pl.BlockSpec(memory_space=pltpu.MemorySpace.VMEM)
    outs = pl.pallas_call(
        _fused_small_kernel,
        out_shape=tuple(jax.ShapeDtypeStruct(v.shape, v.dtype) for v in views),
        in_specs=[vmem] * len(views),
        out_specs=tuple(vmem for _ in views),
    )(*views)
    if len(views) == 1:
        outs = (outs,)
    return [o.reshape(a.shape) for o, a in zip(outs, arrays)]


def _run_tiled(a):
    """Pipelined per-tensor path for large tensors (BlockSpec double-buffering)."""
    n = int(a.size)
    flat = a.reshape(-1)
    rows = -(-n // _COLS)
    sub = _sublane_multiple(a.dtype)
    # At least 2 grid steps (megacore sharding on v7x), rounded to the sublane
    # multiple, capped at 2 MiB-per-buffer tiles.
    half = -(-rows // 2)
    row_tile = min(_ROW_TILE, ((half + sub - 1) // sub) * sub)
    rows_padded = ((rows + row_tile - 1) // row_tile) * row_tile
    total = rows_padded * _COLS
    if total != n:
        flat = jnp.pad(flat, (0, total - n))   # ragged tail only for this tensor
    x2d = flat.reshape(rows_padded, _COLS)

    out2d = pl.pallas_call(
        _scale_relu6,
        out_shape=jax.ShapeDtypeStruct((rows_padded, _COLS), x2d.dtype),
        grid=(rows_padded // row_tile,),
        in_specs=[pl.BlockSpec((row_tile, _COLS), lambda i: (i, 0))],
        out_specs=pl.BlockSpec((row_tile, _COLS), lambda i: (i, 0)),
        compiler_params=pltpu.CompilerParams(
            dimension_semantics=("parallel",)),
    )(x2d)

    out = out2d.reshape(-1)
    if total != n:
        out = out[:n]
    return out.reshape(a.shape)


def model_forward(x, y, z, w):
    """Mirrors Model.forward: relu6(t*2 - 1) for each of the four inputs."""
    # TODO(synk): integer-dtype inputs would need integer ReLU6 semantics; only
    # floating-point dtypes are handled here (matches the reference test).
    inputs = (x, y, z, w)
    nbytes = [int(a.size) * jnp.dtype(a.dtype).itemsize for a in inputs]
    small_idx = [i for i in range(4) if nbytes[i] <= _SMALL_LIMIT]
    large_idx = [i for i in range(4) if nbytes[i] > _SMALL_LIMIT]

    outs = [None] * 4
    if small_idx:
        for i, o in zip(small_idx, _run_fused_small([inputs[i] for i in small_idx])):
            outs[i] = o
    for i in large_idx:
        outs[i] = _run_tiled(inputs[i])
    return tuple(outs)


if __name__ == "__main__":
    key = jax.random.PRNGKey(0)
    kx, ky, kz, kw = jax.random.split(key, 4)

    # Small shapes of decreasing rank, mirroring the pnnx ReLU6 test signature.
    # Scaled by 4 so both clamp edges (0 and 6) fire.
    x = jax.random.uniform(kx, (1, 12, 24, 64), dtype=jnp.float32) * 4.0  # 4D
    y = jax.random.uniform(ky, (1, 12, 24), dtype=jnp.float32) * 4.0      # 3D
    z = jax.random.uniform(kz, (1, 12), dtype=jnp.float32) * 4.0          # 2D
    w = jax.random.uniform(kw, (24,), dtype=jnp.float32) * 4.0            # 1D

    fwd = jax.jit(model_forward)
    outs = jax.block_until_ready(fwd(x, y, z, w))

    # Correctness check against plain JAX reference.
    for inp, got in zip((x, y, z, w), outs):
        ref = jnp.clip(inp * 2.0 - 1.0, 0.0, 6.0)
        assert got.shape == inp.shape and got.dtype == inp.dtype
        assert jnp.allclose(got, ref, atol=1e-6), "mismatch vs reference"

    print("KERNEL_OK")
</pallas_src>

<mosaic_0001>
module attributes {stable_mosaic.version = 11 : i64} {
  func.func @_fused_small_kernel(%arg0: memref<36x512xf32, #tpu.memory_space<vmem>>, %arg1: memref<1x288xf32, #tpu.memory_space<vmem>>, %arg2: memref<1x12xf32, #tpu.memory_space<vmem>>, %arg3: memref<1x24xf32, #tpu.memory_space<vmem>>, %arg4: memref<36x512xf32, #tpu.memory_space<vmem>>, %arg5: memref<1x288xf32, #tpu.memory_space<vmem>>, %arg6: memref<1x12xf32, #tpu.memory_space<vmem>>, %arg7: memref<1x24xf32, #tpu.memory_space<vmem>>) attributes {dimension_semantics = [], scalar_prefetch = 0 : i64, scratch_operands = 0 : i64, tpu.core_type = #tpu.core_type<tc>} {
    %c0 = arith.constant 0 : index
    %c0_0 = arith.constant 0 : index
    %0 = vector.load %arg0[%c0, %c0_0] : memref<36x512xf32, #tpu.memory_space<vmem>>, vector<36x512xf32>
    %cst = arith.constant 2.000000e+00 : f32
    %1 = vector.broadcast %cst : f32 to vector<36x512xf32>
    %2 = arith.mulf %0, %1 : vector<36x512xf32>
    %cst_1 = arith.constant 1.000000e+00 : f32
    %3 = vector.broadcast %cst_1 : f32 to vector<36x512xf32>
    %4 = arith.subf %2, %3 : vector<36x512xf32>
    %cst_2 = arith.constant 0.000000e+00 : f32
    %5 = vector.broadcast %cst_2 : f32 to vector<36x512xf32>
    %6 = arith.maximumf %4, %5 : vector<36x512xf32>
    %cst_3 = arith.constant 6.000000e+00 : f32
    %7 = vector.broadcast %cst_3 : f32 to vector<36x512xf32>
    %8 = arith.minimumf %6, %7 : vector<36x512xf32>
    %c0_4 = arith.constant 0 : index
    %c0_5 = arith.constant 0 : index
    %9 = vector.load %arg4[%c0_4, %c0_5] : memref<36x512xf32, #tpu.memory_space<vmem>>, vector<36x512xf32>
    tpu.vector_store %arg4[%c0_4, %c0_5], %8 {strides = array<i32>} : memref<36x512xf32, #tpu.memory_space<vmem>>, vector<36x512xf32>,
    %c0_6 = arith.constant 0 : index
    %c0_7 = arith.constant 0 : index
    %10 = vector.load %arg1[%c0_6, %c0_7] : memref<1x288xf32, #tpu.memory_space<vmem>>, vector<1x288xf32>
    %cst_8 = arith.constant 2.000000e+00 : f32
    %11 = vector.broadcast %cst_8 : f32 to vector<1x288xf32>
    %12 = arith.mulf %10, %11 : vector<1x288xf32>
    %cst_9 = arith.constant 1.000000e+00 : f32
    %13 = vector.broadcast %cst_9 : f32 to vector<1x288xf32>
    %14 = arith.subf %12, %13 : vector<1x288xf32>
    %cst_10 = arith.constant 0.000000e+00 : f32
    %15 = vector.broadcast %cst_10 : f32 to vector<1x288xf32>
    %16 = arith.maximumf %14, %15 : vector<1x288xf32>
    %cst_11 = arith.constant 6.000000e+00 : f32
    %17 = vector.broadcast %cst_11 : f32 to vector<1x288xf32>
    %18 = arith.minimumf %16, %17 : vector<1x288xf32>
    %c0_12 = arith.constant 0 : index
    %c0_13 = arith.constant 0 : index
    %19 = vector.load %arg5[%c0_12, %c0_13] : memref<1x288xf32, #tpu.memory_space<vmem>>, vector<1x288xf32>
    tpu.vector_store %arg5[%c0_12, %c0_13], %18 {strides = array<i32>} : memref<1x288xf32, #tpu.memory_space<vmem>>, vector<1x288xf32>,
    %c0_14 = arith.constant 0 : index
    %c0_15 = arith.constant 0 : index
    %20 = vector.load %arg2[%c0_14, %c0_15] : memref<1x12xf32, #tpu.memory_space<vmem>>, vector<1x12xf32>
    %cst_16 = arith.constant 2.000000e+00 : f32
    %21 = vector.broadcast %cst_16 : f32 to vector<1x12xf32>
    %22 = arith.mulf %20, %21 : vector<1x12xf32>
    %cst_17 = arith.constant 1.000000e+00 : f32
    %23 = vector.broadcast %cst_17 : f32 to vector<1x12xf32>
    %24 = arith.subf %22, %23 : vector<1x12xf32>
    %cst_18 = arith.constant 0.000000e+00 : f32
    %25 = vector.broadcast %cst_18 : f32 to vector<1x12xf32>
    %26 = arith.maximumf %24, %25 : vector<1x12xf32>
    %cst_19 = arith.constant 6.000000e+00 : f32
    %27 = vector.broadcast %cst_19 : f32 to vector<1x12xf32>
    %28 = arith.minimumf %26, %27 : vector<1x12xf32>
    %c0_20 = arith.constant 0 : index
    %c0_21 = arith.constant 0 : index
    %29 = vector.load %arg6[%c0_20, %c0_21] : memref<1x12xf32, #tpu.memory_space<vmem>>, vector<1x12xf32>
    tpu.vector_store %arg6[%c0_20, %c0_21], %28 {strides = array<i32>} : memref<1x12xf32, #tpu.memory_space<vmem>>, vector<1x12xf32>,
    %c0_22 = arith.constant 0 : index
    %c0_23 = arith.constant 0 : index
    %30 = vector.load %arg3[%c0_22, %c0_23] : memref<1x24xf32, #tpu.memory_space<vmem>>, vector<1x24xf32>
    %cst_24 = arith.constant 2.000000e+00 : f32
    %31 = vector.broadcast %cst_24 : f32 to vector<1x24xf32>
    %32 = arith.mulf %30, %31 : vector<1x24xf32>
    %cst_25 = arith.constant 1.000000e+00 : f32
    %33 = vector.broadcast %cst_25 : f32 to vector<1x24xf32>
    %34 = arith.subf %32, %33 : vector<1x24xf32>
    %cst_26 = arith.constant 0.000000e+00 : f32
    %35 = vector.broadcast %cst_26 : f32 to vector<1x24xf32>
    %36 = arith.maximumf %34, %35 : vector<1x24xf32>
    %cst_27 = arith.constant 6.000000e+00 : f32
    %37 = vector.broadcast %cst_27 : f32 to vector<1x24xf32>
    %38 = arith.minimumf %36, %37 : vector<1x24xf32>
    %c0_28 = arith.constant 0 : index
    %c0_29 = arith.constant 0 : index
    %39 = vector.load %arg7[%c0_28, %c0_29] : memref<1x24xf32, #tpu.memory_space<vmem>>, vector<1x24xf32>
    tpu.vector_store %arg7[%c0_28, %c0_29], %38 {strides = array<i32>} : memref<1x24xf32, #tpu.memory_space<vmem>>, vector<1x24xf32>,
    return
  }
}

</mosaic_0001>

<bundles_post_ra>
// kernel: model_forward.1
= control target key start
LH: loop header
LB: loop body
LE: loop exit
PB: predicated region body
PF: predicated region fallthrough
CT: control target
= control target key end

     0   :  { %13 = vsyncpa [#allocation3], 0  ;;  %vm158_vm0 = vcmask 90112   ;;  %vm165_vm1 = vcmask 188416   ;;  %s276_s28 = smov [#allocation2]   ;;  %s476_s0 = inlined_call_operand.vmem [shape: f32[36,512], index: 0, kind: input, shape index: {}]   ;;  %s477_s1 = inlined_call_operand.vmem [shape: f32[1,288], index: 1, kind: input, shape index: {}]   ;;  %s478_s2 = inlined_call_operand.vmem [shape: f32[1,12], index: 2, kind: input, shape index: {}]   ;;  %s479_s3 = inlined_call_operand.vmem [shape: f32[1,24], index: 3, kind: input, shape index: {}]   ;;  %s480_s4 = inlined_call_operand.vmem [shape: f32[36,512], index: 4, kind: output, shape index: {0}]   ;;  %s481_s5 = inlined_call_operand.vmem [shape: f32[1,288], index: 5, kind: output, shape index: {1}]   ;;  %s482_s6 = inlined_call_operand.hbm [shape: f32[1,12], index: 6, kind: output, shape index: {2}]   ;;  %s483_s7 = inlined_call_operand.hbm [shape: f32[1,24], index: 7, kind: output, shape index: {3}]  }
   0x1   :  { %v153_v0 = vld [vmem:[%s478_s2] sm:$0x1]  ;;  %v24_v5 = vld [vmem:[%s476_s0 + $0x8] sm:$0xff]  ;;  %v25_v6 = vld [vmem:[%s476_s0 + $0x10] sm:$0xff]  ;;  %s177_s29 = sshll.u32 %s276_s28, 4  ;;  %s178_s29 = int_to_ptr.vmem [resolvable:$true] %s177_s29 }
   0x2   :  { %v160_v1 = vld [vmem:[%s479_s3] sm:$0x1]  ;;  %v154_v2 = vmul.f32 2.0, %v153_v0  ;;  %v44_v8 = vmul.f32 2.0, %v24_v5  ;;  %v45_v9 = vmul.f32 2.0, %v25_v6  ;;  %v26_v10 = vld [vmem:[%s476_s0 + $0x18] sm:$0xff] }
   0x3   :  { %v161_v3 = vmul.f32 2.0, %v160_v1  ;;  %v23_v4 = vld [vmem:[%s476_s0] sm:$0xff]  ;;  %v28_v12 = vld [vmem:[%s476_s0 + $0x28] sm:$0xff]  ;;  %v46_v15 = vmul.f32 2.0, %v26_v10  ;;  %v29_v25 = vld [vmem:[%s476_s0 + $0x30] sm:$0xff] }
   0x4   :  { %v43_v7 = vmul.f32 2.0, %v23_v4  ;;  %v27_v11 = vld [vmem:[%s476_s0 + $0x20] sm:$0xff]  ;;  %v224_v13 = vadd.f32 -1.0, %v154_v2  ;;  %v204_v18 = vadd.f32 -1.0, %v44_v8  ;;  %v205_v19 = vadd.f32 -1.0, %v45_v9  ;;  %v30_v30 = vld [vmem:[%s476_s0 + $0x38] sm:$0xff] }
   0x5   :  { %v225_v14 = vadd.f32 -1.0, %v161_v3  ;;  %v47_v16 = vmul.f32 2.0, %v27_v11  ;;  %v48_v20 = vmul.f32 2.0, %v28_v12  ;;  %v206_v23 = vadd.f32 -1.0, %v46_v15  ;;  %v31_v31 = vld [vmem:[%s476_s0 + $0x40] sm:$0xff]  ;;  %v32_v36 = vld [vmem:[%s476_s0 + $0x48] sm:$0xff] }
   0x6   :  { %v203_v17 = vadd.f32 -1.0, %v43_v7  ;;  %v156_v21 = vmax.f32 %v224_v13, 0.0  ;;  %v84_v27 = vmax.f32 %v204_v18, 0.0  ;;  %v85_v28 = vmax.f32 %v205_v19, 0.0  ;;  %v33_v37 = vld [vmem:[%s476_s0 + $0x50] sm:$0xff]  ;;  %v34_v42 = vld [vmem:[%s476_s0 + $0x58] sm:$0xff] }
   0x7   :  { %v163_v22 = vmax.f32 %v225_v14, 0.0  ;;  %v207_v24 = vadd.f32 -1.0, %v47_v16  ;;  %v208_v29 = vadd.f32 -1.0, %v48_v20  ;;  %v86_v34 = vmax.f32 %v206_v23, 0.0  ;;  %v35_v43 = vld [vmem:[%s476_s0 + $0x60] sm:$0xff]  ;;  %v36_v48 = vld [vmem:[%s476_s0 + $0x68] sm:$0xff] }
   0x8   :  { %v83_v26 = vmax.f32 %v203_v17, 0.0  ;;  %v157_v32 = vmin.f32 %v156_v21, 6.0  ;;  %v104_v39 = vmin.f32 %v84_v27, 6.0  ;;  %v105_v40 = vmin.f32 %v85_v28, 6.0  ;;  %v37_v61 = vld [vmem:[%s476_s0 + $0x70] sm:$0xff]  ;;  %v38_v62 = vld [vmem:[%s476_s0 + $0x78] sm:$0xff] }
   0x9   :  { %v164_v33 = vmin.f32 %v163_v22, 6.0  ;;  %v87_v35 = vmax.f32 %v207_v24, 0.0  ;;  %v88_v41 = vmax.f32 %v208_v29, 0.0  ;;  %v106_v44 = vmin.f32 %v86_v34, 6.0  ;;  %v39_v3 = vld [vmem:[%s476_s0 + $0x80] sm:$0xf] }
   0xa   :  { %v103_v38 = vmin.f32 %v83_v26, 6.0  ;;  %159 = vst.msk [vmem:[#allocation2] sm:$0x1] %vm158_vm0, %v157_v32  ;;  %v49_v46 = vmul.f32 2.0, %v29_v25  ;;  %v50_v47 = vmul.f32 2.0, %v30_v30  ;;  %124 = vst [vmem:[%s480_s4 + $0x8] sm:$0xff] %v104_v39 }
   0xb   :  { %166 = vst.msk [vmem:[#allocation4] sm:$0x1] %vm165_vm1, %v164_v33  ;;  %v107_v45 = vmin.f32 %v87_v35, 6.0  ;;  %125 = vst [vmem:[%s480_s4 + $0x10] sm:$0xff] %v105_v40  ;;  %v108_v49 = vmin.f32 %v88_v41, 6.0  ;;  %v51_v50 = vmul.f32 2.0, %v31_v31 }
   0xc   :  { %123 = vst [vmem:[%s480_s4] sm:$0xff] %v103_v38  ;;  %v52_v51 = vmul.f32 2.0, %v32_v36  ;;  %v53_v52 = vmul.f32 2.0, %v33_v37  ;;  %126 = vst [vmem:[%s480_s4 + $0x18] sm:$0xff] %v106_v44  ;;  %v209_v53 = vadd.f32 -1.0, %v49_v46  ;;  %v210_v54 = vadd.f32 -1.0, %v50_v47 }
   0xd   :  { %127 = vst [vmem:[%s480_s4 + $0x20] sm:$0xff] %v107_v45  ;;  %v54_v55 = vmul.f32 2.0, %v34_v42  ;;  %v55_v56 = vmul.f32 2.0, %v35_v43  ;;  %128 = vst [vmem:[%s480_s4 + $0x28] sm:$0xff] %v108_v49  ;;  %v211_v57 = vadd.f32 -1.0, %v51_v50  ;;  %v56_v60 = vmul.f32 2.0, %v36_v48 }
   0xe   :  { %v212_v58 = vadd.f32 -1.0, %v52_v51  ;;  %v213_v59 = vadd.f32 -1.0, %v53_v52  ;;  %v89_v63 = vmax.f32 %v209_v53, 0.0  ;;  %v90_v0 = vmax.f32 %v210_v54, 0.0  ;;  %v40_v4 = vld [vmem:[%s476_s0 + $0x88] sm:$0xf] }
   0xf   :  { %v214_v1 = vadd.f32 -1.0, %v54_v55  ;;  %v215_v2 = vadd.f32 -1.0, %v55_v56  ;;  %v41_v5 = vld [vmem:[%s476_s0 + $0x90] sm:$0xf]  ;;  %v91_v6 = vmax.f32 %v211_v57, 0.0  ;;  %v216_v9 = vadd.f32 -1.0, %v56_v60 }
  0x10   :  { %v92_v7 = vmax.f32 %v212_v58, 0.0  ;;  %v93_v8 = vmax.f32 %v213_v59, 0.0  ;;  %v42_v10 = vld [vmem:[%s476_s0 + $0x98] sm:$0xf]  ;;  %v143_v11 = vld [vmem:[%s477_s1] sm:$0x7] }
  0x11   :  { %14 = vsyncpa [#allocation5], 0  ;;  %v109_v12 = vmin.f32 %v89_v63, 6.0  ;;  %v110_v13 = vmin.f32 %v90_v0, 6.0  ;;  %v94_v14 = vmax.f32 %v214_v1, 0.0  ;;  %v95_v15 = vmax.f32 %v215_v2, 0.0  ;;  %p233_p1 = scmp.lt.s32.totalorder %s178_s29, %s178_s29 }
  0x12   :  { %s228_s2 = scalar_lea.vmem %s178_s29, 16  ;;  %s232_s3 = scalar_lea.vmem %s178_s29, 32 }
  0x13   :  { %p229_p0 = scmp.ne.s32.totalorder %s178_s29, %s228_s2  ;;  %p234_p2 = scmp.lt.s32.totalorder %s232_s3, %s228_s2 }
  0x15   :  { %p235_p3 = por %p234_p2, %p233_p1 }
  0x17   :  { %p236_p4 = pnand %p235_p3, %p229_p0 }
  0x19   :  { %239 = shalt.err (!%p236_p4)
}
  0x1a   :  { %s240_s12 = scalar_lea.hbm %s482_s6, 16 }
  0x1b   :  { %p241_p5 = scmp.ne.s32.totalorder %s482_s6, %s240_s12  ;;  %p244_p6 = scmp.lt.u32.totalorder %s240_s12, %s482_s6 }
  0x1d   :  { %p246_p7 = pnand %p244_p6, %p241_p5 }
  0x1f   :  { %249 = shalt.err (!%p246_p7)
}
  0x20   :  { %180 = dma.vmem_to_hbm [thread:$0]  %s178_s29, 16, %s482_s6, [#allocation3]   ;;  %v111_v16 = vmin.f32 %v91_v6, 6.0  ;;  %v112_v17 = vmin.f32 %v92_v7, 6.0  ;;  %v113_v18 = vmin.f32 %v93_v8, 6.0  ;;  %v96_v19 = vmax.f32 %v216_v9, 0.0 }
  0x21   :  { %s277_s18 = smov [#allocation4]   ;;  %129 = vst [vmem:[%s480_s4 + $0x30] sm:$0xff] %v109_v12  ;;  %130 = vst [vmem:[%s480_s4 + $0x38] sm:$0xff] %v110_v13  ;;  %v114_v20 = vmin.f32 %v94_v14, 6.0  ;;  %v115_v21 = vmin.f32 %v95_v15, 6.0  ;;  %v57_v22 = vmul.f32 2.0, %v37_v61 }
  0x22   :  { %s187_s19 = sshll.u32 %s277_s18, 4  ;;  %v58_v23 = vmul.f32 2.0, %v38_v62  ;;  %131 = vst [vmem:[%s480_s4 + $0x40] sm:$0xff] %v111_v16  ;;  %132 = vst [vmem:[%s480_s4 + $0x48] sm:$0xff] %v112_v17  ;;  %v116_v24 = vmin.f32 %v96_v19, 6.0  ;;  %v59_v25 = vmul.f32 2.0, %v39_v3  ;;  %s188_s19 = int_to_ptr.vmem [resolvable:$true] %s187_s19 }
  0x23   :  { %133 = vst [vmem:[%s480_s4 + $0x50] sm:$0xff] %v113_v18  ;;  %v60_v26 = vmul.f32 2.0, %v40_v4  ;;  %v61_v27 = vmul.f32 2.0, %v41_v5  ;;  %s250_s29 = scalar_lea.vmem %s188_s19, 16  ;;  %s254_s30 = scalar_lea.vmem %s188_s19, 32 }
  0x24   :  { %p251_p8 = scmp.ne.s32.totalorder %s188_s19, %s250_s29  ;;  %p255_p9 = scmp.lt.s32.totalorder %s188_s19, %s188_s19 }
  0x25   :  { %p256_p10 = scmp.lt.s32.totalorder %s254_s30, %s250_s29 }
  0x27   :  { %p257_p11 = por %p256_p10, %p255_p9 }
  0x29   :  { %p258_p12 = pnand %p257_p11, %p251_p8 }
  0x2b   :  { %261 = shalt.err (!%p258_p12)
}
  0x2c   :  { %s262_s10 = scalar_lea.hbm %s483_s7, 16 }
  0x2d   :  { %p263_p13 = scmp.ne.s32.totalorder %s483_s7, %s262_s10  ;;  %p266_p0 = scmp.lt.u32.totalorder %s262_s10, %s483_s7 }
  0x2f   :  { %p268_p1 = pnand %p266_p0, %p263_p13 }
  0x31   :  { %271 = shalt.err (!%p268_p1)
}
  0x32   :  { %190 = dma.vmem_to_hbm [thread:$0]  %s188_s19, 16, %s483_s7, [#allocation5]   ;;  %134 = vst [vmem:[%s480_s4 + $0x58] sm:$0xff] %v114_v20  ;;  %135 = vst [vmem:[%s480_s4 + $0x60] sm:$0xff] %v115_v21  ;;  %v217_v28 = vadd.f32 -1.0, %v57_v22  ;;  %v218_v29 = vadd.f32 -1.0, %v58_v23  ;;  %v148_v35 = vlaneseq }
  0x33   :  { %v62_v30 = vmul.f32 2.0, %v42_v10  ;;  %v144_v31 = vmul.f32 2.0, %v143_v11  ;;  %136 = vst [vmem:[%s480_s4 + $0x68] sm:$0xff] %v116_v24  ;;  %v219_v32 = vadd.f32 -1.0, %v59_v25  ;;  %v220_v33 = vadd.f32 -1.0, %v60_v26 }
  0x34   :  { %v221_v34 = vadd.f32 -1.0, %v61_v27  ;;  %v97_v36 = vmax.f32 %v217_v28, 0.0  ;;  %v98_v37 = vmax.f32 %v218_v29, 0.0  ;;  %vm150_vm2 = vcmp.lt.s32.totalorder %v148_v35, 288 }
  0x35   :  { %v222_v38 = vadd.f32 -1.0, %v62_v30  ;;  %v223_v39 = vadd.f32 -1.0, %v144_v31  ;;  %v99_v40 = vmax.f32 %v219_v32, 0.0  ;;  %v100_v41 = vmax.f32 %v220_v33, 0.0 }
  0x36   :  { %v101_v42 = vmax.f32 %v221_v34, 0.0  ;;  %v117_v43 = vmin.f32 %v97_v36, 6.0  ;;  %v118_v44 = vmin.f32 %v98_v37, 6.0 }
  0x37   :  { %v102_v45 = vmax.f32 %v222_v38, 0.0  ;;  %v146_v46 = vmax.f32 %v223_v39, 0.0  ;;  %v119_v47 = vmin.f32 %v99_v40, 6.0  ;;  %v120_v48 = vmin.f32 %v100_v41, 6.0 }
  0x38   :  { %v121_v49 = vmin.f32 %v101_v42, 6.0  ;;  %137 = vst [vmem:[%s480_s4 + $0x70] sm:$0xff] %v117_v43  ;;  %138 = vst [vmem:[%s480_s4 + $0x78] sm:$0xff] %v118_v44 }
  0x39   :  { %v122_v50 = vmin.f32 %v102_v45, 6.0  ;;  %v147_v51 = vmin.f32 %v146_v46, 6.0  ;;  %139 = vst [vmem:[%s480_s4 + $0x80] sm:$0xf] %v119_v47  ;;  %140 = vst [vmem:[%s480_s4 + $0x88] sm:$0xf] %v120_v48 }
  0x3a   :  { %141 = vst [vmem:[%s480_s4 + $0x90] sm:$0xf] %v121_v49 }
  0x3b   :  { %142 = vst [vmem:[%s480_s4 + $0x98] sm:$0xf] %v122_v50  ;;  %152 = vst.msk [vmem:[%s481_s5] sm:$0x7] %vm150_vm2, %v147_v51 }
  0x3c   :  { %272 = dma.done.wait [#allocation3], 16  }
  0x3d   :  { %273 = vsyncadd [#allocation3], 4294967280 }
  0x3e   :  { %274 = dma.done.wait [#allocation5], 16  }
  0x3f   :  { %275 = vsyncadd [#allocation5], 4294967280 }
  0x40   :  { %201 = vsyncpa [#allocation3], 1 }
  0x41   :  { %202 = vsyncpa [#allocation5], 1 }

</bundles_post_ra>
